<compile_context>
chip_gen: v6e
topology: v6e:2x2x1
jax: 0.10.0
libtpu: 0.0.40
codegen_flags: <defaults>
</compile_context>

<pallas_src>
import functools

import jax
import jax.numpy as jnp
from jax import lax
from jax.experimental import pallas as pl
from jax.experimental.pallas import tpu as pltpu


def _round_up(x, m):
    return ((x + m - 1) // m) * m


# ------------------------------ Pallas kernels --------------------------------

def _gap_single_tile_kernel(x_ref, o_ref, *, inv_s):
    """Whole reduction axis fits in one block: direct row-sum + scale."""
    x = x_ref[...].astype(jnp.float32)
    o_ref[...] = (jnp.sum(x, axis=-1, keepdims=True) * inv_s).astype(o_ref.dtype)


def _gap_multi_tile_kernel(x_ref, o_ref, acc_ref, *, ts, rem, inv_s):
    """Row mean of a (M, S) matrix with the reduction axis tiled (grid axis 1).

    acc_ref: lane-dense (tm, 128) f32 accumulator of per-lane-group partial
    sums (pure VPU adds).  One cross-lane reduce + scale runs only on the last
    spatial tile.  rem = S % ts is a static Python int; tail masking is
    confined to the last tile and to the single straddling 128-lane group.
    """
    j = pl.program_id(1)
    last = pl.num_programs(1) - 1
    n_grp = ts // 128

    @pl.when(j == 0)
    def _():
        acc_ref[...] = jnp.zeros_like(acc_ref)

    def partial_sum(num_full, tail_valid):
        # Sum aligned 128-lane groups of this tile into one (tm, 128) value.
        p = None
        for c in range(num_full):
            blk = x_ref[:, c * 128:(c + 1) * 128].astype(jnp.float32)
            p = blk if p is None else p + blk
        if tail_valid:
            c = num_full
            blk = x_ref[:, c * 128:(c + 1) * 128].astype(jnp.float32)
            lane = lax.broadcasted_iota(jnp.int32, blk.shape, 1)
            blk = jnp.where(lane < tail_valid, blk, 0.0)
            p = blk if p is None else p + blk
        return p

    if rem == 0:
        acc_ref[...] += partial_sum(n_grp, 0)
    else:
        @pl.when(j < last)
        def _():
            acc_ref[...] += partial_sum(n_grp, 0)

        @pl.when(j == last)
        def _():
            acc_ref[...] += partial_sum(rem // 128, rem % 128)

    @pl.when(j == last)
    def _():
        total = jnp.sum(acc_ref[...], axis=-1, keepdims=True)
        o_ref[...] = (total * inv_s).astype(o_ref.dtype)


# --------------------------------- wrapper -------------------------------------

def global_avg_pool_2d(x, *, max_ts=2048, target_block_bytes=4 * 1024 * 1024,
                       max_tm=8192):
    """GlobalAvgPool2d forward: (B, C, H, W) -> (B, C), mean over H*W."""
    B, C, H, W = x.shape
    M = B * C
    S = H * W
    x2d = x.reshape(M, S)                 # free view for contiguous NCHW
    itemsize = x2d.dtype.itemsize

    # -- reduction-axis tiling: lane dim must be a multiple of 128 or full S --
    if S <= max_ts:
        ts_eff, grid_s = S, 1
        lane_bytes = max(_round_up(S, 128), 128) * itemsize
    else:
        ts_eff = max_ts                                   # multiple of 128
        grid_s = pl.cdiv(S, ts_eff)
        lane_bytes = ts_eff * itemsize

    # -- row-axis tiling: ~target_block_bytes per block, multiple of 8 --------
    tm = max(8, min(max_tm, (target_block_bytes // lane_bytes) // 8 * 8))
    if M <= tm:
        if M > 8:
            # Keep >= 2 row blocks so both v7x TensorCores get work.
            tm_eff = _round_up(pl.cdiv(M, 2), 8)
        else:
            tm_eff = M                                    # single full-extent block
    else:
        tm_eff = tm
    grid_m = pl.cdiv(M, tm_eff)

    inv_s = 1.0 / S
    cost = pl.CostEstimate(flops=M * S, transcendentals=0,
                           bytes_accessed=M * S * itemsize + M * itemsize)
    vmem_limit = 32 * 1024 * 1024

    if grid_s == 1:
        out2d = pl.pallas_call(
            functools.partial(_gap_single_tile_kernel, inv_s=inv_s),
            out_shape=jax.ShapeDtypeStruct((M, 1), x.dtype),
            grid=(grid_m,),
            in_specs=[pl.BlockSpec((tm_eff, S), lambda i: (i, 0))],
            out_specs=pl.BlockSpec((tm_eff, 1), lambda i: (i, 0)),
            compiler_params=pltpu.CompilerParams(
                dimension_semantics=("parallel",),
                vmem_limit_bytes=vmem_limit),
            cost_estimate=cost,
        )(x2d)
    else:
        rem = S % ts_eff
        out2d = pl.pallas_call(
            functools.partial(_gap_multi_tile_kernel, ts=ts_eff, rem=rem,
                              inv_s=inv_s),
            out_shape=jax.ShapeDtypeStruct((M, 1), x.dtype),
            grid=(grid_m, grid_s),
            in_specs=[pl.BlockSpec((tm_eff, ts_eff), lambda i, j: (i, j))],
            out_specs=pl.BlockSpec((tm_eff, 1), lambda i, j: (i, 0)),
            scratch_shapes=[pltpu.VMEM((tm_eff, 128), jnp.float32)],
            compiler_params=pltpu.CompilerParams(
                dimension_semantics=("parallel", "arbitrary"),
                vmem_limit_bytes=vmem_limit),
            cost_estimate=cost,
        )(x2d)

    return out2d.reshape(B, C)


# --------------------------- pure-JAX reference ---------------------------------

def ref_global_avg_pool_2d(x):
    B, C = x.shape[:2]
    return x.reshape(B, C, -1).mean(axis=2)


# ----------------------------------- main ---------------------------------------

if __name__ == "__main__":
    key = jax.random.PRNGKey(0)
    k1, k2, k3 = jax.random.split(key, 3)

    # Primary case matching the module spec: batch=2, channels=4, spatial=16x16
    # (single spatial tile, single row block).
    x = jax.random.normal(k1, (2, 4, 16, 16), jnp.float32)
    y = global_avg_pool_2d(x)
    jax.block_until_ready(y)
    assert y.shape == (2, 4), y.shape
    y_ref = ref_global_avg_pool_2d(x)
    assert jnp.allclose(y, y_ref, rtol=1e-5, atol=1e-5), \
        float(jnp.max(jnp.abs(y - y_ref)))

    # Multi row-block path (M=32 -> 2 row blocks of 16), full-S block (S=360).
    x2 = jax.random.normal(k2, (2, 16, 18, 20), jnp.float32)
    y2 = global_avg_pool_2d(x2)
    jax.block_until_ready(y2)
    assert y2.shape == (2, 16), y2.shape
    y2_ref = ref_global_avg_pool_2d(x2)
    assert jnp.allclose(y2, y2_ref, rtol=1e-5, atol=1e-5), \
        float(jnp.max(jnp.abs(y2 - y2_ref)))

    # Multi spatial-tile path with masked tail: S=50*45=2250 -> ts=2048,
    # grid_s=2, rem=202 (1 full group + 74-lane partial); M=16 -> 2 row blocks.
    x3 = jax.random.normal(k3, (2, 8, 50, 45), jnp.float32)
    y3 = global_avg_pool_2d(x3)
    jax.block_until_ready(y3)
    assert y3.shape == (2, 8), y3.shape
    y3_ref = ref_global_avg_pool_2d(x3)
    assert jnp.allclose(y3, y3_ref, rtol=1e-5, atol=1e-5), \
        float(jnp.max(jnp.abs(y3 - y3_ref)))

    print("KERNEL_OK")
</pallas_src>

<mosaic_0001>
module attributes {stable_mosaic.version = 11 : i64} {
  func.func @_gap_single_tile_kernel(%arg0: i32, %arg1: memref<8x256xf32, #tpu.memory_space<vmem>>, %arg2: memref<8x1xf32, #tpu.memory_space<vmem>>) attributes {dimension_semantics = [#tpu.dimension_semantics<parallel>], iteration_bounds = array<i64: 1>, scalar_prefetch = 0 : i64, scratch_operands = 0 : i64, tpu.core_type = #tpu.core_type<tc>, window_params = [{transform_indices = @transform_0, window_bounds = array<i64: 8, 256>}, {transform_indices = @transform_1, window_bounds = array<i64: 8, 1>}]} {
    %c0 = arith.constant 0 : index
    %c0_0 = arith.constant 0 : index
    %0 = vector.load %arg1[%c0, %c0_0] : memref<8x256xf32, #tpu.memory_space<vmem>>, vector<8x256xf32>
    %cst = arith.constant dense<0.000000e+00> : vector<8xf32>
    %1 = vector.multi_reduction <add>, %0, %cst [1] : vector<8x256xf32> to vector<8xf32>
    %2 = vector.shape_cast %1 : vector<8xf32> to vector<8x1xf32>
    %cst_1 = arith.constant 3.906250e-03 : f32
    %3 = vector.broadcast %cst_1 : f32 to vector<8x1xf32>
    %4 = arith.mulf %2, %3 : vector<8x1xf32>
    %c0_2 = arith.constant 0 : index
    %c0_3 = arith.constant 0 : index
    %5 = vector.load %arg2[%c0_2, %c0_3] : memref<8x1xf32, #tpu.memory_space<vmem>>, vector<8x1xf32>
    tpu.vector_store %arg2[%c0_2, %c0_3], %4 {strides = array<i32>} : memref<8x1xf32, #tpu.memory_space<vmem>>, vector<8x1xf32>,
    return
  }
  func.func @transform_0(%arg0: i32) -> (i32, i32) {
    %c0_i32 = arith.constant 0 : i32
    %c0_i32_0 = arith.constant 0 : i32
    return %arg0, %c0_i32 : i32, i32
  }
  func.func @transform_1(%arg0: i32) -> (i32, i32) {
    %c0_i32 = arith.constant 0 : i32
    %c0_i32_0 = arith.constant 0 : i32
    return %arg0, %c0_i32 : i32, i32
  }
}

</mosaic_0001>

<bundles_post_ra>
// kernel: tpu_custom_call.1
= control target key start
LH: loop header
LB: loop body
LE: loop exit
PB: predicated region body
PF: predicated region fallthrough
CT: control target
= control target key end

     0   :  { %6 = vsyncpa [#allocation3], 0  ;;  %s56_s6 = smov [#allocation2]   ;;  %s73_s0 = inlined_call_operand.hbm [shape: f32[8,256], index: 0, kind: input, shape index: {}]   ;;  %s74_s1 = inlined_call_operand.vmem [shape: f32[8,1], index: 1, kind: output, shape index: {}]  }
   0x1   :  { %s13_s7 = sshll.u32 %s56_s6, 4  ;;  %s14_s7 = int_to_ptr.vmem [resolvable:$true] %s13_s7 }
   0x2   :  { %s42_s8 = scalar_lea.vmem %s14_s7, 256  ;;  %p47_p1 = scmp.lt.s32.totalorder %s14_s7, %s14_s7 }
   0x3   :  { %p43_p0 = scmp.ne.s32.totalorder %s14_s7, %s42_s8  ;;  %p48_p2 = scmp.lt.s32.totalorder %s42_s8, %s42_s8 }
   0x5   :  { %p49_p3 = por %p48_p2, %p47_p1 }
   0x7   :  { %p50_p4 = pnand %p49_p3, %p43_p0 }
   0x9   :  { %53 = shalt.err (!%p50_p4)
}
   0xa   :  { %16 = dma.hbm_to_vmem [thread:$0]  %s73_s0, 256, %s14_s7, [#allocation3]  }
   0xb   :  { %54 = dma.done.wait [#allocation3], 256  }
   0xc   :  { %55 = vsyncadd [#allocation3], 4294967040  ;;  %v20_v0 = vld [vmem:[#allocation2] sm:$0xff]  ;;  %v21_v1 = vld [vmem:[#allocation2 + $0x8] sm:$0xff]  ;;  %vm26_vm0 = vcmask 7168  }
   0xd   :  { %v22_v2 = vadd.f32 %v21_v1, %v20_v0 }
   0xf   :  { %23 = vadd.xlane.f32.xlu0 %v22_v2 }
  0x98   :  { %v24_v3 = vpop.xlane.xlu0 %23 }
  0x99   :  { %v25_v4 = vmul.f32 0.00390625, %v24_v3 }
  0x9b   :  { %27 = vst.msk [vmem:[%s74_s1] sm:$0xff] %vm26_vm0, %v25_v4 }
  0x9c   :  { %32 = vsyncpa [#allocation3], 1 }

</bundles_post_ra>
